<compile_context>
chip_gen: v5e
topology: v5e:2x2
jax: 0.10.0
libtpu: 0.0.40
codegen_flags: <defaults>
</compile_context>

<pallas_src>
import jax
import jax.numpy as jnp
from jax.experimental import pallas as pl
from jax.experimental.pallas import tpu as pltpu


LANES = 128          # vreg lane width
MAX_TILE_ROWS = 512  # 512*128*4 B = 256 KiB per f32 buffer (well inside VMEM)


def linear_tanh_kernel(x_ref, w_ref, b_ref, o_ref):
    # x_ref/o_ref: (TILE_ROWS, 128) VMEM tiles.
    # w_ref/b_ref: (1, 1) SMEM scalars.
    w = w_ref[0, 0]
    b = b_ref[0, 0]
    o_ref[...] = jnp.tanh(x_ref[...] * w + b)


def net_forward(x, weight, bias):
    """x: (B, 1) f32, weight: (1, 1) f32, bias: (1,) f32 -> (B, 1) f32."""
    B, F = x.shape
    assert F == 1 and weight.shape == (1, 1) and bias.shape == (1,)

    # ---- lane-dense re-layout: (B, 1) -> padded (rows, 128) slab ----------
    flat = x.reshape(-1)                       # (B,)
    n = flat.shape[0]
    rows_needed = -(-n // LANES)               # cdiv(B, 128)
    rows_min = ((rows_needed + 7) // 8) * 8    # sublane-align rows
    tile_rows = min(MAX_TILE_ROWS, rows_min)
    rows = ((rows_min + tile_rows - 1) // tile_rows) * tile_rows
    padded = rows * LANES
    x2d = jnp.pad(flat, (0, padded - n)).reshape(rows, LANES)

    w2d = weight.reshape(1, 1)
    b2d = bias.reshape(1, 1)

    grid = (rows // tile_rows,)

    out2d = pl.pallas_call(
        linear_tanh_kernel,
        out_shape=jax.ShapeDtypeStruct((rows, LANES), x.dtype),
        grid_spec=pl.GridSpec(
            grid=grid,
            in_specs=[
                # lane-dense data tiles, auto double-buffered
                pl.BlockSpec((tile_rows, LANES), lambda i: (i, 0)),
                # scalars via SMEM (no VMEM DMAs / vector loads)
                pl.BlockSpec(memory_space=pltpu.MemorySpace.SMEM),
                pl.BlockSpec(memory_space=pltpu.MemorySpace.SMEM),
            ],
            out_specs=pl.BlockSpec((tile_rows, LANES), lambda i: (i, 0)),
        ),
        compiler_params=pltpu.CompilerParams(
            dimension_semantics=("parallel",),
        ),
    )(x2d, w2d, b2d)

    # drop padding, restore (B, 1)
    return out2d.reshape(-1)[:n].reshape(B, 1)


if __name__ == "__main__":
    key = jax.random.PRNGKey(0)
    kx, kw, kb, kx2 = jax.random.split(key, 4)

    # Parameters mimicking nn.Linear(1, 1) init:
    # U(-1/sqrt(fan_in), 1/sqrt(fan_in)) = U(-1, 1) for fan_in = 1.
    weight = jax.random.uniform(kw, (1, 1), jnp.float32, minval=-1.0, maxval=1.0)
    bias = jax.random.uniform(kb, (1,), jnp.float32, minval=-1.0, maxval=1.0)

    # Small input consistent with the module: batch=8, features=1.
    x = jax.random.normal(kx, (8, 1), jnp.float32)
    out = jax.block_until_ready(net_forward(x, weight, bias))
    ref = jnp.tanh(x @ weight.T + bias)
    assert out.shape == (8, 1)
    assert jnp.allclose(out, ref, atol=1e-6), "mismatch vs reference (B=8)"

    # Extra check with a batch that is not a multiple of 128 to exercise the
    # lane-dense padding + tail slicing path.
    x2 = jax.random.normal(kx2, (300, 1), jnp.float32)
    out2 = jax.block_until_ready(net_forward(x2, weight, bias))
    ref2 = jnp.tanh(x2 @ weight.T + bias)
    assert out2.shape == (300, 1)
    assert jnp.allclose(out2, ref2, atol=1e-6), "mismatch vs reference (B=300)"

    print("KERNEL_OK")
</pallas_src>

<mosaic_0001>
module attributes {stable_mosaic.version = 11 : i64} {
  func.func @linear_tanh_kernel(%arg0: i32, %arg1: memref<8x128xf32, #tpu.memory_space<vmem>>, %arg2: memref<1x1xf32, #tpu.memory_space<smem>>, %arg3: memref<1x1xf32, #tpu.memory_space<smem>>, %arg4: memref<8x128xf32, #tpu.memory_space<vmem>>) attributes {dimension_semantics = [#tpu.dimension_semantics<parallel>], iteration_bounds = array<i64: 1>, scalar_prefetch = 0 : i64, scratch_operands = 0 : i64, tpu.core_type = #tpu.core_type<tc>, window_params = [{transform_indices = @transform_0, window_bounds = array<i64: 8, 128>}, {transform_indices = @transform_1, window_bounds = array<i64: 1, 1>}, {transform_indices = @transform_2, window_bounds = array<i64: 1, 1>}, {transform_indices = @transform_3, window_bounds = array<i64: 8, 128>}]} {
    %c0 = arith.constant 0 : index
    %c0_0 = arith.constant 0 : index
    %0 = memref.load %arg2[%c0, %c0_0] : memref<1x1xf32, #tpu.memory_space<smem>>
    %c0_1 = arith.constant 0 : index
    %c0_2 = arith.constant 0 : index
    %1 = memref.load %arg3[%c0_1, %c0_2] : memref<1x1xf32, #tpu.memory_space<smem>>
    %c0_3 = arith.constant 0 : index
    %c0_4 = arith.constant 0 : index
    %2 = vector.load %arg1[%c0_3, %c0_4] : memref<8x128xf32, #tpu.memory_space<vmem>>, vector<8x128xf32>
    %3 = vector.broadcast %0 : f32 to vector<8x128xf32>
    %4 = arith.mulf %2, %3 : vector<8x128xf32>
    %5 = vector.broadcast %1 : f32 to vector<8x128xf32>
    %6 = arith.addf %4, %5 : vector<8x128xf32>
    %7 = math.tanh %6 : vector<8x128xf32>
    %c0_5 = arith.constant 0 : index
    %c0_6 = arith.constant 0 : index
    %8 = vector.load %arg4[%c0_5, %c0_6] : memref<8x128xf32, #tpu.memory_space<vmem>>, vector<8x128xf32>
    tpu.vector_store %arg4[%c0_5, %c0_6], %7 {strides = array<i32>} : memref<8x128xf32, #tpu.memory_space<vmem>>, vector<8x128xf32>,
    return
  }
  func.func @transform_0(%arg0: i32) -> (i32, i32) {
    %c0_i32 = arith.constant 0 : i32
    %c0_i32_0 = arith.constant 0 : i32
    return %arg0, %c0_i32 : i32, i32
  }
  func.func @transform_1(%arg0: i32) -> (i32, i32) {
    %c0_i32 = arith.constant 0 : i32
    %c0_i32_0 = arith.constant 0 : i32
    %c0_i32_1 = arith.constant 0 : i32
    return %c0_i32, %c0_i32_0 : i32, i32
  }
  func.func @transform_2(%arg0: i32) -> (i32, i32) {
    %c0_i32 = arith.constant 0 : i32
    %c0_i32_0 = arith.constant 0 : i32
    %c0_i32_1 = arith.constant 0 : i32
    return %c0_i32, %c0_i32_0 : i32, i32
  }
  func.func @transform_3(%arg0: i32) -> (i32, i32) {
    %c0_i32 = arith.constant 0 : i32
    %c0_i32_0 = arith.constant 0 : i32
    return %arg0, %c0_i32 : i32, i32
  }
}

</mosaic_0001>

<bundles_post_ra>
// kernel: tpu_custom_call.1
= control target key start
LH: loop header
LB: loop body
LE: loop exit
PB: predicated region body
PF: predicated region fallthrough
CT: control target
= control target key end

     0   :  { %10 = vsyncpa [#allocation5], 0  ;;  %s147_s0 = inlined_call_operand.hbm [shape: f32[8,128], index: 0, kind: input, shape index: {}]   ;;  %s148_s1 = inlined_call_operand.<no memory space> [shape: f32[1,1], index: 1, kind: input, shape index: {}]   ;;  %s149_s2 = inlined_call_operand.<no memory space> [shape: f32[1,1], index: 2, kind: input, shape index: {}]   ;;  %s150_s3 = inlined_call_operand.hbm [shape: f32[8,128], index: 3, kind: output, shape index: {}]  }
   0x1   :  { %11 = vsyncpa [#allocation6], 0  ;;  %s17_s14 = sshll.u32 %s147_s0, 4  ;;  %s113_s15 = smov [#allocation4]   ;;  %s18_s14 = int_to_ptr.hbm [resolvable:$true] %s17_s14 }
   0x2   :  { %s19_s16 = sshll.u32 %s113_s15, 4  ;;  %s20_s16 = int_to_ptr.vmem [resolvable:$true] %s19_s16 }
   0x3   :  { %22 = dma.hbm_to_vmem [thread:$0]  %s18_s14, 128, %s20_s16, [#allocation5]  }
   0x4   :  { %109 = dma.done.wait [#allocation5], 128  }
   0x5   :  { %110 = vsyncadd [#allocation5], 4294967168  ;;  %v34_v0 = vstv %s148_s1  ;;  %v33_v1 = vld [vmem:[#allocation4] sm:$0xff]  ;;  %v36_v2 = vstv %s149_s2  ;;  %s114_s0 = smov [#allocation7]   ;;  %s47_s24 = sshll.u32 %s150_s3, 4  ;;  %s48_s24 = int_to_ptr.hbm [resolvable:$true] %s47_s24 }
   0x6   :  { %v35_v3 = vmul.f32 %v34_v0, %v33_v1  ;;  %s45_s21 = sshll.u32 %s114_s0, 4  ;;  %s46_s21 = int_to_ptr.vmem [resolvable:$true] %s45_s21 }
   0x8   :  { %v37_v4 = vadd.f32 %v36_v2, %v35_v3 }
   0xa   :  { %59 = vtanh.f32 %v37_v4 }
  0x10   :  { %v60_v5 = vpop.eup %59 }
  0x11   :  { %39 = vst [vmem:[#allocation7] sm:$0xff] %v60_v5 }
  0x12   :  { %50 = dma.vmem_to_hbm [thread:$0]  %s46_s21, 128, %s48_s24, [#allocation6]  }
  0x13   :  { %111 = dma.done.wait [#allocation6], 128  }
  0x14   :  { %112 = vsyncadd [#allocation6], 4294967168 }
  0x15   :  { %55 = vsyncpa [#allocation5], 1 }
  0x16   :  { %56 = vsyncpa [#allocation6], 1 }

</bundles_post_ra>
